<compile_context>
chip_gen: v5e
topology: v5e:2x2
jax: 0.10.0
libtpu: 0.0.40
codegen_flags: <defaults>
</compile_context>

<pallas_src>
import functools

import jax
import jax.numpy as jnp
from jax.experimental import pallas as pl
from jax.experimental.pallas import tpu as pltpu


def _lsq_activation_kernel(scale_ref, x_ref, o_ref, *, valmin, valmax, skip_bit):
    # scale_ref: (1,) f32 in SMEM; x_ref/o_ref: VMEM tiles (1-D or 2-D).
    s = scale_ref[0]
    x = x_ref[...].astype(jnp.float32)

    # Keep the true vector divide (not x * (1/s)) so rounding buckets are
    # bit-exact with the PyTorch torch.div -> round path; the kernel is
    # HBM-bound so the divide is hidden behind the DMA anyway.
    x_scale = x / s
    x_clip = jnp.clip(x_scale, valmin, valmax)      # F.hardtanh(min_val, max_val)
    x_round = jnp.round(x_clip)                     # round-half-to-even == torch.round

    if skip_bit:
        step = float(2 ** skip_bit)
        inv_step = 1.0 / step                       # exact: step is a power of two
        # sign(x) * floor(|x| / step) * step == trunc(x * inv_step) * step
        x_round = jnp.trunc(x_round * inv_step) * step

    o_ref[...] = (x_round * s).astype(o_ref.dtype)


_LANE_CANDIDATES = (1024, 512, 256, 128)
_MIN_SPLIT_BYTES = 1 << 20   # only force a >=2-step grid above ~1 MiB of data


def _tpu_generation():
    """Best-effort TPU generation detection (0 if unknown)."""
    try:
        kind = jax.devices()[0].device_kind.lower()
    except Exception:
        return 0
    if "v7" in kind or "7x" in kind:
        return 7
    if "v6" in kind:
        return 6
    if "v5" in kind:
        return 5
    if "v4" in kind:
        return 4
    return 0


def _block_config(in_itemsize, gen):
    """Per-generation (target block bytes, vmem_limit_bytes or None)."""
    if gen >= 7:
        # 3.2 TB/s HBM: larger blocks amortize the ~0.35us/step overhead.
        # 8 MiB x (in + out) x double-buffer ~ 32 MiB, so raise the scoped
        # limit explicitly (physical VMEM is 64 MiB per TC).
        return 8 << 20, 48 << 20
    if gen == 6:
        # 4 MiB x 2 x 2 = 16 MiB, comfortably inside the 32 MiB scoped default.
        return 4 << 20, None
    # v5e / unknown: stay inside the 16 MiB scoped-VMEM default, leaving room
    # for the f32 upcast intermediates when the input dtype is sub-32-bit.
    if in_itemsize < 4:
        return 1 << 20, None
    return 2 << 20, None


def lsq_activation(x, scale, *, valmin, valmax, skip_bit=None, _block_bytes=None):
    """Forward of LsqActivation. x: any shape (e.g. NCHW); scale: shape (1,)."""
    x = jnp.asarray(x)
    scale = jnp.asarray(scale)
    orig_shape = x.shape
    n = x.size
    in_itemsize = jnp.dtype(x.dtype).itemsize
    # Torch type promotion: bf16 x with f32 scale parameter returns f32.
    out_dtype = jnp.result_type(x.dtype, scale.dtype)
    out_itemsize = jnp.dtype(out_dtype).itemsize
    bpe = max(4, in_itemsize, out_itemsize)          # sizing in compute dtype (f32)

    gen = _tpu_generation()
    block_bytes, vmem_limit = _block_config(in_itemsize, gen)
    if _block_bytes is not None:                      # test hook for small shapes
        block_bytes = int(_block_bytes)

    kernel = functools.partial(
        _lsq_activation_kernel,
        valmin=float(valmin), valmax=float(valmax), skip_bit=skip_bit)
    scale_f32 = scale.reshape((1,)).astype(jnp.float32)

    cost = pl.CostEstimate(
        flops=8 * n, transcendentals=0,
        bytes_accessed=n * (in_itemsize + out_itemsize))
    cparams = pltpu.CompilerParams(
        dimension_semantics=("parallel",),            # v7x: shard grid over both TCs
        vmem_limit_bytes=vmem_limit)

    lane = next((c for c in _LANE_CANDIDATES if n >= c and n % c == 0), None)

    if lane is not None:
        # ---- lane-dense 2-D path: no pad, no slice, reshape is free --------
        rows = n // lane
        sublane_min = 8 * max(1, 4 // in_itemsize)    # f32:8  bf16/f16:16  int8:32
        tile_rows = max(sublane_min,
                        (block_bytes // (lane * bpe)) // sublane_min * sublane_min)
        if tile_rows >= rows:
            if (gen >= 7 and rows * lane * bpe >= _MIN_SPLIT_BYTES
                    and rows >= 2 * sublane_min):
                # Keep >= 2 balanced grid steps so both v7x TensorCores get work.
                tile_rows = pl.cdiv(pl.cdiv(rows, 2), sublane_min) * sublane_min
            else:
                tile_rows = rows                      # full-extent: always legal
        x2d = x.reshape(rows, lane)
        out = pl.pallas_call(
            kernel,
            out_shape=jax.ShapeDtypeStruct((rows, lane), out_dtype),
            grid=(pl.cdiv(rows, tile_rows),),
            in_specs=[
                pl.BlockSpec(memory_space=pltpu.MemorySpace.SMEM),   # scale (1,)
                pl.BlockSpec((tile_rows, lane), lambda i: (i, 0)),   # x tile
            ],
            out_specs=pl.BlockSpec((tile_rows, lane), lambda i: (i, 0)),
            compiler_params=cparams,
            cost_estimate=cost,
        )(scale_f32, x2d)
        return out.reshape(orig_shape)

    # ---- ragged fallback: stream the flat 1-D array directly ---------------
    # Pallas masks the partial last block, so no jnp.pad / out[:n] HBM passes.
    flat = x.reshape(-1)
    # Conservative /8 on the block target: a 1-D VMEM block may carry sublane
    # padding in its on-chip layout, so keep the worst case inside the budget.
    block_elems = max(1024, (block_bytes // (bpe * 8)) // 1024 * 1024)
    if block_elems >= n:
        if gen >= 7 and n * bpe >= _MIN_SPLIT_BYTES and n >= 2 * 1024:
            block_elems = pl.cdiv(pl.cdiv(n, 2), 1024) * 1024
        else:
            block_elems = n                           # full-extent block: always legal
    out = pl.pallas_call(
        kernel,
        out_shape=jax.ShapeDtypeStruct((n,), out_dtype),
        grid=(pl.cdiv(n, block_elems),),
        in_specs=[
            pl.BlockSpec(memory_space=pltpu.MemorySpace.SMEM),       # scale (1,)
            pl.BlockSpec((block_elems,), lambda i: (i,)),            # x chunk
        ],
        out_specs=pl.BlockSpec((block_elems,), lambda i: (i,)),
        compiler_params=cparams,
        cost_estimate=cost,
    )(scale_f32, flat)
    return out.reshape(orig_shape)


def lsq_activation_ref(x, scale, *, valmin, valmax, skip_bit=None):
    """Pure-JAX reference (mirrors the PyTorch forward exactly)."""
    s = scale.reshape(())
    x_scale = x / s
    x_clip = jnp.clip(x_scale, valmin, valmax)
    x_round = jnp.round(x_clip)
    if skip_bit:
        step = float(2 ** skip_bit)
        sign = jnp.sign(x_round)
        x_round = jnp.floor(jnp.abs(x_round) / step) * step
        x_round = x_round * sign
    return x_round * s


# TODO(synk): the custom STE backward (grad_activation / grad_scale) of
# LsqActivationFun is not implemented; this script covers the forward only.


if __name__ == "__main__":
    # Constraint ~ signed 8-bit levels: arange(-128, 128) -> valmin=-128, valmax=127
    constraint = jnp.arange(-128, 128, dtype=jnp.float32)
    valmin = float(constraint.min())
    valmax = float(constraint.max())

    key = jax.random.PRNGKey(0)
    kx, kr, kq = jax.random.split(key, 3)

    # Small NCHW activation, matching typical conv-activation usage.
    x = jax.random.normal(kx, (2, 4, 16, 16), dtype=jnp.float32) * 3.0
    # scale parameter: shape (1,) (module default is ones(1); use a non-trivial
    # positive value to exercise the math).
    scale = jnp.ones((1,), dtype=jnp.float32) * 0.05

    # skip_bit=None path (default module config), lane-dense 2-D path.
    out = lsq_activation(x, scale, valmin=valmin, valmax=valmax, skip_bit=None)
    jax.block_until_ready(out)
    ref = lsq_activation_ref(x, scale, valmin=valmin, valmax=valmax, skip_bit=None)
    assert out.shape == x.shape and out.dtype == x.dtype
    assert jnp.allclose(out, ref, atol=1e-6), "mismatch (skip_bit=None)"

    # skip_bit=2 path.
    out2 = lsq_activation(x, scale, valmin=valmin, valmax=valmax, skip_bit=2)
    jax.block_until_ready(out2)
    ref2 = lsq_activation_ref(x, scale, valmin=valmin, valmax=valmax, skip_bit=2)
    assert jnp.allclose(out2, ref2, atol=1e-6), "mismatch (skip_bit=2)"

    # Ragged shape: 1-D full-extent block (no pad, no slice).
    xr = jax.random.normal(kr, (3, 5, 7), dtype=jnp.float32) * 3.0
    out3 = lsq_activation(xr, scale, valmin=valmin, valmax=valmax, skip_bit=None)
    jax.block_until_ready(out3)
    ref3 = lsq_activation_ref(xr, scale, valmin=valmin, valmax=valmax, skip_bit=None)
    assert out3.shape == xr.shape
    assert jnp.allclose(out3, ref3, atol=1e-6), "mismatch (ragged, single block)"

    # Ragged shape with a forced-small block: exercises the multi-block 1-D
    # path with a Pallas-masked partial last block.
    xq = jax.random.normal(kq, (3, 5, 701), dtype=jnp.float32) * 3.0
    out4 = lsq_activation(xq, scale, valmin=valmin, valmax=valmax, skip_bit=2,
                          _block_bytes=64 * 1024)
    jax.block_until_ready(out4)
    ref4 = lsq_activation_ref(xq, scale, valmin=valmin, valmax=valmax, skip_bit=2)
    assert out4.shape == xq.shape
    assert jnp.allclose(out4, ref4, atol=1e-6), "mismatch (ragged, multi block)"

    print("KERNEL_OK")
</pallas_src>

<mosaic_0001>
module attributes {stable_mosaic.version = 11 : i64} {
  func.func @_lsq_activation_kernel(%arg0: i32, %arg1: memref<1xf32, #tpu.memory_space<smem>>, %arg2: memref<2x1024xf32, #tpu.memory_space<vmem>>, %arg3: memref<2x1024xf32, #tpu.memory_space<vmem>>) attributes {dimension_semantics = [#tpu.dimension_semantics<parallel>], iteration_bounds = array<i64: 1>, scalar_prefetch = 0 : i64, scratch_operands = 0 : i64, tpu.core_type = #tpu.core_type<tc>, window_params = [{transform_indices = @transform_0, window_bounds = array<i64: 1>}, {transform_indices = @transform_1, window_bounds = array<i64: 2, 1024>}, {transform_indices = @transform_2, window_bounds = array<i64: 2, 1024>}]} {
    %c0 = arith.constant 0 : index
    %0 = memref.load %arg1[%c0] : memref<1xf32, #tpu.memory_space<smem>>
    %c0_0 = arith.constant 0 : index
    %c0_1 = arith.constant 0 : index
    %1 = vector.load %arg2[%c0_0, %c0_1] : memref<2x1024xf32, #tpu.memory_space<vmem>>, vector<2x1024xf32>
    %2 = vector.broadcast %0 : f32 to vector<2x1024xf32>
    %3 = arith.divf %1, %2 : vector<2x1024xf32>
    %cst = arith.constant -1.280000e+02 : f32
    %cst_2 = arith.constant 1.270000e+02 : f32
    %4 = vector.broadcast %cst : f32 to vector<2x1024xf32>
    %5 = arith.maximumf %4, %3 : vector<2x1024xf32>
    %6 = vector.broadcast %cst_2 : f32 to vector<2x1024xf32>
    %7 = arith.minimumf %6, %5 : vector<2x1024xf32>
    %8 = math.roundeven %7 : vector<2x1024xf32>
    %9 = vector.broadcast %0 : f32 to vector<2x1024xf32>
    %10 = arith.mulf %8, %9 : vector<2x1024xf32>
    %c0_3 = arith.constant 0 : index
    %c0_4 = arith.constant 0 : index
    %11 = vector.load %arg3[%c0_3, %c0_4] : memref<2x1024xf32, #tpu.memory_space<vmem>>, vector<2x1024xf32>
    tpu.vector_store %arg3[%c0_3, %c0_4], %10 {strides = array<i32>} : memref<2x1024xf32, #tpu.memory_space<vmem>>, vector<2x1024xf32>,
    return
  }
  func.func @transform_0(%arg0: i32) -> i32 {
    %c0_i32 = arith.constant 0 : i32
    %c0_i32_0 = arith.constant 0 : i32
    return %c0_i32 : i32
  }
  func.func @transform_1(%arg0: i32) -> (i32, i32) {
    %c0_i32 = arith.constant 0 : i32
    %c0_i32_0 = arith.constant 0 : i32
    return %arg0, %c0_i32 : i32, i32
  }
  func.func @transform_2(%arg0: i32) -> (i32, i32) {
    %c0_i32 = arith.constant 0 : i32
    %c0_i32_0 = arith.constant 0 : i32
    return %arg0, %c0_i32 : i32, i32
  }
}

</mosaic_0001>

<bundles_post_ra>
// kernel: tpu_custom_call.1
= control target key start
LH: loop header
LB: loop body
LE: loop exit
PB: predicated region body
PF: predicated region fallthrough
CT: control target
= control target key end

     0   :  { %8 = vsyncpa [#allocation4], 0  ;;  %s172_s0 = inlined_call_operand.<no memory space> [shape: f32[1], index: 0, kind: input, shape index: {}]   ;;  %s173_s1 = inlined_call_operand.hbm [shape: f32[2,1024], index: 1, kind: input, shape index: {}]   ;;  %s174_s2 = inlined_call_operand.hbm [shape: f32[2,1024], index: 2, kind: output, shape index: {}]  }
   0x1   :  { %9 = vsyncpa [#allocation5], 0  ;;  %s17_s11 = sshll.u32 %s173_s1, 4  ;;  %s146_s12 = smov [#allocation3]   ;;  %s18_s11 = int_to_ptr.hbm [resolvable:$true] %s17_s11 }
   0x2   :  { %s19_s13 = sshll.u32 %s146_s12, 4  ;;  %s20_s13 = int_to_ptr.vmem [resolvable:$true] %s19_s13 }
   0x3   :  { %22 = dma.hbm_to_vmem [thread:$0]  %s18_s11, 256, %s20_s13, [#allocation4]  }
   0x4   :  { %142 = dma.done.wait [#allocation4], 256  }
   0x5   :  { %143 = vsyncadd [#allocation4], 4294967040  ;;  %v30_v0 = vstv %s172_s0  ;;  %v28_v9 = vld [vmem:[#allocation3] sm:$0xff]  ;;  %v29_v10 = vld [vmem:[#allocation3 + $0x8] sm:$0xff]  ;;  %s147_s0 = smov [#allocation6]   ;;  %s64_s18 = sshll.u32 %s174_s2, 4  ;;  %s65_s18 = int_to_ptr.hbm [resolvable:$true] %s64_s18 }
   0x6   :  { %92 = vrcp.f32 %v30_v0  ;;  %v42_v3 = vand.u32 2147483648, %v30_v0  ;;  %vm36_vm0 = vweird.f32 %v30_v0  ;;  %v40_v5 = vand.u32 2147483647, %v30_v0  ;;  %s62_s1 = sshll.u32 %s147_s0, 4  ;;  %s63_s1 = int_to_ptr.vmem [resolvable:$true] %s62_s1 }
   0x8   :  { %v43_v7 = vor.u32 1.1754944e-38, %v42_v3  ;;  %vm41_vm3 = vcmp.eq.f32.partialorder %v40_v5, 8.507059e+37 }
   0xc   :  { %v93_v1 = vpop.eup %92 }
   0xd   :  { %v32_v2 = vmul.f32 %v93_v1, %v30_v0  ;;  %vm37_vm1 = vweird.f32 %v93_v1 }
   0xe   :  { %vm38_vm2 = vmor %vm36_vm0, %vm37_vm1 }
   0xf   :  { %v33_v4 = vsub.f32 1.0, %v32_v2 }
  0x11   :  { %v34_v6 = vmul.f32 %v93_v1, %v33_v4 }
  0x13   :  { %v35_v8 = vadd.f32 %v93_v1, %v34_v6 }
  0x15   :  { %v39_v11 = vsel %vm38_vm2, %v93_v1, %v35_v8 }
  0x16   :  { %v44_v12 = vsel %vm41_vm3, %v43_v7, %v39_v11 }
  0x17   :  { %v45_v13 = vmul.f32 %v44_v12, %v28_v9  ;;  %v46_v14 = vmul.f32 %v44_v12, %v29_v10 }
  0x19   :  { %v47_v15 = vmax.f32 %v45_v13, -128.0  ;;  %v48_v16 = vmax.f32 %v46_v14, -128.0 }
  0x1b   :  { %v49_v17 = vmin.f32 %v47_v15, 127.0  ;;  %v50_v18 = vmin.f32 %v48_v16, 127.0 }
  0x1d   :  { %v76_v19 = vcvt.f32.s32 %v49_v17  ;;  %v74_v20 = vand.u32 2147483647, %v49_v17  ;;  %v84_v21 = vcvt.f32.s32 %v50_v18  ;;  %v79_v23 = vand.u32 2147483648, %v49_v17 }
  0x1e   :  { %v82_v24 = vand.u32 2147483647, %v50_v18  ;;  %v87_v26 = vand.u32 2147483648, %v50_v18 }
  0x1f   :  { %v77_v22 = vcvt.s32.f32 %v76_v19  ;;  %v85_v25 = vcvt.s32.f32 %v84_v21  ;;  %vm75_vm4 = vcmp.lt.f32.partialorder %v74_v20, 8388608.0 }
  0x20   :  { %vm83_vm5 = vcmp.lt.f32.partialorder %v82_v24, 8388608.0 }
  0x21   :  { %v78_v27 = vand.u32 2147483647, %v77_v22  ;;  %v86_v28 = vand.u32 2147483647, %v85_v25 }
  0x23   :  { %v80_v29 = vor.u32 %v79_v23, %v78_v27  ;;  %v88_v30 = vor.u32 %v87_v26, %v86_v28 }
  0x25   :  { %v81_v31 = vsel %vm75_vm4, %v80_v29, %v49_v17  ;;  %v89_v33 = vsel %vm83_vm5, %v88_v30, %v50_v18 }
  0x26   :  { %v53_v32 = vmul.f32 %v81_v31, %v30_v0  ;;  %v54_v34 = vmul.f32 %v89_v33, %v30_v0 }
  0x28   :  { %55 = vst [vmem:[#allocation6] sm:$0xff] %v53_v32 }
  0x29   :  { %56 = vst [vmem:[#allocation6 + $0x8] sm:$0xff] %v54_v34 }
  0x2a   :  { %67 = dma.vmem_to_hbm [thread:$0]  %s63_s1, 256, %s65_s18, [#allocation5]  }
  0x2b   :  { %144 = dma.done.wait [#allocation5], 256  }
  0x2c   :  { %145 = vsyncadd [#allocation5], 4294967040 }
  0x2d   :  { %72 = vsyncpa [#allocation4], 1 }
  0x2e   :  { %73 = vsyncpa [#allocation5], 1 }

</bundles_post_ra>
